<compile_context>
chip_gen: v7x
topology: tpu7x:2x2x1
jax: 0.10.0
libtpu: 0.0.40
codegen_flags: <defaults>
</compile_context>

<pallas_src>
import functools

import jax
import jax.numpy as jnp
from jax import lax
from jax.experimental import pallas as pl
from jax.experimental.pallas import tpu as pltpu

_MIB = 1024 * 1024
_VMEM_LIMIT_BYTES = 32 * _MIB            # safe on v5e/v6e (128 MiB) and v7x (64 MiB)
_FUSED_MAX_F32_BYTES = 4 * _MIB          # fused path if an f32 copy of x is <= this
_TILE_TARGET_F32_BYTES = 2 * _MIB        # ~2 MiB f32-equivalent per (1, C, TL) block
_MAX_UNPADDED_BLOCK_F32_BYTES = 6 * _MIB  # keep TL = L (no pad) up to this block size


def _round_up(v, m):
    return ((v + m - 1) // m) * m


def _pick_tl(C, L_pad, target_bytes):
    """Largest multiple-of-128 divisor of L_pad with f32 block ~<= target_bytes."""
    assert L_pad % 128 == 0
    m = L_pad // 128
    max_d = max(1, min(m, (target_bytes // max(1, C * 4)) // 128))
    d = max_d
    while d > 1 and m % d != 0:
        d -= 1
    return 128 * d


# ---------------------------------------------------------------------------
# Kernels
# ---------------------------------------------------------------------------

def _bn_fused_kernel(x_ref, gamma_ref, beta_ref, o_ref, *, inv_count, eps):
    """Single-pass path: whole (B, C, L) tensor resident in VMEM."""
    x = x_ref[...].astype(jnp.float32)                       # (B, C, L)
    s = jnp.sum(x, axis=(0, 2), keepdims=True)               # (1, C, 1)
    ss = jnp.sum(x * x, axis=(0, 2), keepdims=True)
    mean = s * inv_count
    var = jnp.maximum(ss * inv_count - mean * mean, 0.0)     # guard cancellation
    scale = gamma_ref[...] * lax.rsqrt(var + eps)            # (1, C, 1)
    shift = beta_ref[...] - mean * scale
    o_ref[...] = (x * scale + shift).astype(o_ref.dtype)


def _bn_stats_kernel(x_ref, sum_ref, sumsq_ref):
    """Pass 1: per-(batch-row, channel) partial sum / sum-of-squares (f32)."""
    @pl.when(pl.program_id(1) == 0)
    def _init():
        sum_ref[...] = jnp.zeros_like(sum_ref)
        sumsq_ref[...] = jnp.zeros_like(sumsq_ref)

    x = x_ref[...].astype(jnp.float32)                       # (1, C, TL)
    sum_ref[...] += jnp.sum(x, axis=2, keepdims=True)        # (1, C, 1)
    sumsq_ref[...] += jnp.sum(x * x, axis=2, keepdims=True)


def _bn_norm_kernel(x_ref, scale_ref, shift_ref, o_ref):
    """Pass 2: one broadcasted FMA per lane-dense tile, native-dtype I/O."""
    x = x_ref[...].astype(jnp.float32)                       # (1, C, TL)
    o_ref[...] = (x * scale_ref[...] + shift_ref[...]).astype(o_ref.dtype)


# ---------------------------------------------------------------------------
# Wrapper
# ---------------------------------------------------------------------------

def batch_norm1d(x, gamma=None, beta=None, *, eps=1e-5, allow_fused=True,
                 tile_target_bytes=_TILE_TARGET_F32_BYTES,
                 max_unpadded_block_bytes=_MAX_UNPADDED_BLOCK_F32_BYTES):
    """nn.BatchNorm1d training-mode forward. x: (B, C, L) or (B, C)."""
    squeeze_l = (x.ndim == 2)
    if squeeze_l:
        x = x[:, :, None]
    B, C, L = x.shape
    inv_count = 1.0 / float(B * L)

    if gamma is None:   # affine=False
        gamma = jnp.ones((C,), jnp.float32)
    if beta is None:
        beta = jnp.zeros((C,), jnp.float32)
    gamma = gamma.astype(jnp.float32)
    beta = beta.astype(jnp.float32)

    # ---- Fused single-pass fast path: 1 HBM read + 1 HBM write. ----
    if allow_fused and B * C * L * 4 <= _FUSED_MAX_F32_BYTES:
        y = pl.pallas_call(
            functools.partial(_bn_fused_kernel, inv_count=inv_count, eps=float(eps)),
            out_shape=jax.ShapeDtypeStruct((B, C, L), x.dtype),
            compiler_params=pltpu.CompilerParams(
                vmem_limit_bytes=_VMEM_LIMIT_BYTES),
        )(x, gamma.reshape(1, C, 1), beta.reshape(1, C, 1))
        return y[:, :, 0] if squeeze_l else y

    # ---- Two-pass path over the native (B, C, L) layout. ----
    # TODO(synk): extremely large C (block (1, C, 128) > VMEM budget) would need
    # an extra channel-tiled grid axis; not implemented.
    if L % 128 == 0:
        L_pad, TL = L, _pick_tl(C, L, tile_target_bytes)
    elif C * L * 4 <= max_unpadded_block_bytes:
        L_pad, TL = L, L                        # single full-L block, no padding
    else:
        L_pad = _round_up(L, 128)               # rare fallback: pad L, slice output
        TL = _pick_tl(C, L_pad, tile_target_bytes)

    x_p = x if L_pad == L else jnp.pad(x, ((0, 0), (0, 0), (0, L_pad - L)))
    n_l = L_pad // TL

    x_spec = pl.BlockSpec((1, C, TL), lambda b, l: (b, 0, l))
    stat_spec = pl.BlockSpec((1, C, 1), lambda b, l: (b, 0, 0))
    const_spec = pl.BlockSpec((1, C, 1), lambda b, l: (0, 0, 0))

    # Pass 1: per-batch-row partial stats; batch axis 'parallel' so both
    # TensorCores (v7x megacore) share the stats pass; L axis is the reduction.
    sum_b, sumsq_b = pl.pallas_call(
        _bn_stats_kernel,
        out_shape=[jax.ShapeDtypeStruct((B, C, 1), jnp.float32)] * 2,
        grid_spec=pltpu.PrefetchScalarGridSpec(
            num_scalar_prefetch=0,
            grid=(B, n_l),
            in_specs=[x_spec],
            out_specs=[stat_spec, stat_spec],
        ),
        compiler_params=pltpu.CompilerParams(
            dimension_semantics=("parallel", "arbitrary"),
            vmem_limit_bytes=_VMEM_LIMIT_BYTES),
    )(x_p)

    # Tiny per-channel epilogue, hoisted out of the pass-2 inner loop.
    sum_c = jnp.sum(sum_b, axis=0)[:, 0]                     # (C,)
    sumsq_c = jnp.sum(sumsq_b, axis=0)[:, 0]
    mean = sum_c * inv_count
    var = jnp.maximum(sumsq_c * inv_count - mean * mean, 0.0)
    scale = gamma * lax.rsqrt(var + eps)
    shift = beta - mean * scale

    # Pass 2: normalize + affine, fully parallel grid, native-dtype in/out.
    y_p = pl.pallas_call(
        _bn_norm_kernel,
        out_shape=jax.ShapeDtypeStruct((B, C, L_pad), x.dtype),
        grid_spec=pltpu.PrefetchScalarGridSpec(
            num_scalar_prefetch=0,
            grid=(B, n_l),
            in_specs=[x_spec, const_spec, const_spec],
            out_specs=x_spec,
        ),
        compiler_params=pltpu.CompilerParams(
            dimension_semantics=("parallel", "parallel"),
            vmem_limit_bytes=_VMEM_LIMIT_BYTES),
    )(x_p, scale.reshape(1, C, 1), shift.reshape(1, C, 1))

    y = y_p if L_pad == L else y_p[:, :, :L]
    return y[:, :, 0] if squeeze_l else y


def batch_norm1d_reference(x, gamma=None, beta=None, eps=1e-5):
    """Pure-JAX reference (training-mode BatchNorm1d, biased variance)."""
    mean = jnp.mean(x, axis=(0, 2), keepdims=True)
    var = jnp.mean(jnp.square(x - mean), axis=(0, 2), keepdims=True)
    y = (x - mean) * lax.rsqrt(var + eps)
    if gamma is not None:
        y = y * gamma[None, :, None]
    if beta is not None:
        y = y + beta[None, :, None]
    return y


if __name__ == "__main__":
    key = jax.random.PRNGKey(0)
    kx, kg, kb, kx2, kx3, kx4 = jax.random.split(key, 6)

    # Primary small example: x (B=2, C=4, L=16) in nn.BatchNorm1d's (N, C, L) layout.
    B, C, L = 2, 4, 16
    x = jax.random.normal(kx, (B, C, L), dtype=jnp.float32)
    gamma = jax.random.uniform(kg, (C,), minval=0.5, maxval=1.5, dtype=jnp.float32)
    beta = jax.random.uniform(kb, (C,), minval=-0.5, maxval=0.5, dtype=jnp.float32)

    out = jax.block_until_ready(batch_norm1d(x, gamma, beta))        # fused path
    ref = batch_norm1d_reference(x, gamma, beta)
    assert out.shape == (B, C, L)
    assert jnp.allclose(out, ref, atol=1e-4, rtol=1e-4)

    out_plain = jax.block_until_ready(batch_norm1d(x))               # affine=False
    assert jnp.allclose(out_plain, batch_norm1d_reference(x), atol=1e-4, rtol=1e-4)

    # Two-pass tiled path (L a multiple of 128).
    x2 = jax.random.normal(kx2, (2, 8, 256), dtype=jnp.float32)
    out2 = jax.block_until_ready(batch_norm1d(x2, allow_fused=False))
    assert jnp.allclose(out2, batch_norm1d_reference(x2), atol=1e-4, rtol=1e-4)

    # Two-pass path with an unpadded full-L block (L not a multiple of 128).
    x3 = jax.random.normal(kx3, (3, 5, 48), dtype=jnp.float32)
    out3 = jax.block_until_ready(batch_norm1d(x3, allow_fused=False))
    assert jnp.allclose(out3, batch_norm1d_reference(x3), atol=1e-4, rtol=1e-4)

    # Forced padded-L fallback exercises the pad + slice branch.
    out3p = jax.block_until_ready(
        batch_norm1d(x3, allow_fused=False, max_unpadded_block_bytes=0))
    assert jnp.allclose(out3p, batch_norm1d_reference(x3), atol=1e-4, rtol=1e-4)

    # Native-dtype (bf16) streaming: bf16 in, bf16 out, f32 accumulation.
    x4 = jax.random.normal(kx4, (2, 4, 128), dtype=jnp.bfloat16)
    out4 = jax.block_until_ready(batch_norm1d(x4, allow_fused=False))
    assert out4.dtype == jnp.bfloat16
    ref4 = batch_norm1d_reference(x4.astype(jnp.float32))
    assert jnp.allclose(out4.astype(jnp.float32), ref4, atol=5e-2, rtol=5e-2)

    print("KERNEL_OK")
</pallas_src>

<mosaic_0001>
module attributes {stable_mosaic.version = 11 : i64} {
  func.func @_bn_fused_kernel(%arg0: memref<2x4x16xf32, #tpu.memory_space<vmem>>, %arg1: memref<1x4x1xf32, #tpu.memory_space<vmem>>, %arg2: memref<1x4x1xf32, #tpu.memory_space<vmem>>, %arg3: memref<2x4x16xf32, #tpu.memory_space<vmem>>) attributes {dimension_semantics = [], scalar_prefetch = 0 : i64, scratch_operands = 0 : i64, tpu.core_type = #tpu.core_type<tc>} {
    %c0 = arith.constant 0 : index
    %c0_0 = arith.constant 0 : index
    %c0_1 = arith.constant 0 : index
    %0 = vector.load %arg0[%c0, %c0_0, %c0_1] : memref<2x4x16xf32, #tpu.memory_space<vmem>>, vector<2x4x16xf32>
    %cst = arith.constant dense<0.000000e+00> : vector<4xf32>
    %1 = vector.multi_reduction <add>, %0, %cst [0, 2] : vector<2x4x16xf32> to vector<4xf32>
    %2 = vector.shape_cast %1 : vector<4xf32> to vector<1x4x1xf32>
    %3 = arith.mulf %0, %0 : vector<2x4x16xf32>
    %cst_2 = arith.constant dense<0.000000e+00> : vector<4xf32>
    %4 = vector.multi_reduction <add>, %3, %cst_2 [0, 2] : vector<2x4x16xf32> to vector<4xf32>
    %5 = vector.shape_cast %4 : vector<4xf32> to vector<1x4x1xf32>
    %cst_3 = arith.constant 3.125000e-02 : f32
    %6 = vector.broadcast %cst_3 : f32 to vector<1x4x1xf32>
    %7 = arith.mulf %2, %6 : vector<1x4x1xf32>
    %cst_4 = arith.constant 3.125000e-02 : f32
    %8 = vector.broadcast %cst_4 : f32 to vector<1x4x1xf32>
    %9 = arith.mulf %5, %8 : vector<1x4x1xf32>
    %10 = arith.mulf %7, %7 : vector<1x4x1xf32>
    %11 = arith.subf %9, %10 : vector<1x4x1xf32>
    %cst_5 = arith.constant 0.000000e+00 : f32
    %12 = vector.broadcast %cst_5 : f32 to vector<1x4x1xf32>
    %13 = arith.maximumf %11, %12 : vector<1x4x1xf32>
    %c0_6 = arith.constant 0 : index
    %c0_7 = arith.constant 0 : index
    %c0_8 = arith.constant 0 : index
    %14 = vector.load %arg1[%c0_6, %c0_7, %c0_8] : memref<1x4x1xf32, #tpu.memory_space<vmem>>, vector<1x4x1xf32>
    %cst_9 = arith.constant 9.99999974E-6 : f32
    %15 = vector.broadcast %cst_9 : f32 to vector<1x4x1xf32>
    %16 = arith.addf %13, %15 : vector<1x4x1xf32>
    %17 = math.rsqrt %16 : vector<1x4x1xf32>
    %18 = arith.mulf %14, %17 : vector<1x4x1xf32>
    %c0_10 = arith.constant 0 : index
    %c0_11 = arith.constant 0 : index
    %c0_12 = arith.constant 0 : index
    %19 = vector.load %arg2[%c0_10, %c0_11, %c0_12] : memref<1x4x1xf32, #tpu.memory_space<vmem>>, vector<1x4x1xf32>
    %20 = arith.mulf %7, %18 : vector<1x4x1xf32>
    %21 = arith.subf %19, %20 : vector<1x4x1xf32>
    %22 = vector.broadcast %18 : vector<1x4x1xf32> to vector<2x4x16xf32>
    %23 = arith.mulf %0, %22 : vector<2x4x16xf32>
    %24 = vector.broadcast %21 : vector<1x4x1xf32> to vector<2x4x16xf32>
    %25 = arith.addf %23, %24 : vector<2x4x16xf32>
    %c0_13 = arith.constant 0 : index
    %c0_14 = arith.constant 0 : index
    %c0_15 = arith.constant 0 : index
    %26 = vector.load %arg3[%c0_13, %c0_14, %c0_15] : memref<2x4x16xf32, #tpu.memory_space<vmem>>, vector<2x4x16xf32>
    tpu.vector_store %arg3[%c0_13, %c0_14, %c0_15], %25 {strides = array<i32>} : memref<2x4x16xf32, #tpu.memory_space<vmem>>, vector<2x4x16xf32>,
    return
  }
}

</mosaic_0001>

<bundles_post_ra>
// kernel: tpu_custom_call.1
= control target key start
LH: loop header
LB: loop body
LE: loop exit
PB: predicated region body
PF: predicated region fallthrough
CT: control target
= control target key end

     0   :  { %vm17_vm0 = vcmask 125952   ;;  %s160_s0 = inlined_call_operand.vmem [shape: f32[2,4,16], index: 0, kind: input, shape index: {}]   ;;  %s161_s1 = inlined_call_operand.vmem [shape: f32[1,4,1], index: 1, kind: input, shape index: {}]   ;;  %s162_s2 = inlined_call_operand.vmem [shape: f32[1,4,1], index: 2, kind: input, shape index: {}]   ;;  %s163_s3 = inlined_call_operand.hbm [shape: f32[2,4,16], index: 3, kind: output, shape index: {}]  }
   0x1   :  { %v15_v0 = vld [vmem:[%s160_s0] sm:$0xf]  ;;  %v16_v1 = vld [vmem:[%s160_s0 + $0x4] sm:$0xf] }
   0x2   :  { %v18_v2 = vsel %vm17_vm0, %v15_v0, 0.0  ;;  %v19_v3 = vsel %vm17_vm0, %v16_v1, 0.0  ;;  %v23_v4 = vmul.f32 %v15_v0, %v15_v0  ;;  %v24_v5 = vmul.f32 %v16_v1, %v16_v1 }
   0x3   :  { %8 = vsyncpa [#allocation3], 0  ;;  %v20_v6 = vadd.f32 %v19_v3, %v18_v2  ;;  %v106_v10 = vmov 0   ;;  %v35_v19 = vld [vmem:[%s161_s1] sm:$0xf]  ;;  %s107_s19 = smov [#allocation2]  }
   0x4   :  { %v25_v7 = vsel %vm17_vm0, %v23_v4, 0.0  ;;  %v26_v8 = vsel %vm17_vm0, %v24_v5, 0.0  ;;  %78 = vset.pattern.permute.xlu1 %v106_v10  ;;  %79 = vset.pattern.permute.xlu0 %v106_v10  ;;  %v39_v22 = vld [vmem:[%s162_s2] sm:$0xf]  ;;  %s63_s20 = sshll.u32 %s107_s19, 4  ;;  %s64_s20 = int_to_ptr.vmem [resolvable:$true] %s63_s20 }
   0x5   :  { %21 = vadd.xlane.f32.xlu0 %v20_v6  ;;  %v27_v9 = vadd.f32 %v26_v8, %v25_v7  ;;  %s82_s1 = scalar_lea.vmem %s64_s20, 128  ;;  %p87_p1 = scmp.lt.s32.totalorder %s64_s20, %s64_s20 }
   0x6   :  { %p83_p0 = scmp.ne.s32.totalorder %s64_s20, %s82_s1  ;;  %p88_p2 = scmp.lt.s32.totalorder %s82_s1, %s82_s1 }
   0x8   :  { %p89_p3 = por %p88_p2, %p87_p1 }
   0x9   :  { %28 = vadd.xlane.f32.xlu0 %v27_v9 }
   0xa   :  { %p90_p4 = pnand %p89_p3, %p83_p0 }
  0x92   :  { %v22_v11 = vpop.xlane.xlu0 %21 }
  0x93   :  { %v30_v12 = vmul.f32 0.03125, %v22_v11 }
  0x95   :  { %v32_v14 = vmul.f32 %v30_v12, %v30_v12 }
  0x96   :  { %v29_v13 = vpop.xlane.xlu0 %28 }
  0x97   :  { %v31_v15 = vmul.f32 0.03125, %v29_v13 }
  0x99   :  { %v33_v16 = vsub.f32 %v31_v15, %v32_v14 }
  0x9b   :  { %v34_v17 = vmax.f32 %v33_v16, 0.0 }
  0x9d   :  { %v36_v18 = vadd.f32 1e-05, %v34_v17 }
  0x9f   :  { %80 = vrsqrt.f32 %v36_v18 }
  0xa9   :  { %v81_v20 = vpop.eup %80 }
  0xaa   :  { %v38_v21 = vmul.f32 %v81_v20, %v35_v19 }
  0xac   :  { %44 = vperm.xlu1 %78, %v38_v21   ;;  %v40_v23 = vmul.f32 %v38_v21, %v30_v12 }
  0xae   :  { %v41_v24 = vsub.f32 %v39_v22, %v40_v23 }
  0xb0   :  { %51 = vperm.xlu1 %78, %v41_v24  }
 0x12b   :  { %v45_v25 = vpop.permute.xlu1 %44 }
 0x12c   :  { %v47_v26 = vmul.f32 %v45_v25, %v15_v0  ;;  %v48_v27 = vmul.f32 %v45_v25, %v16_v1 }
 0x12f   :  { %v52_v28 = vpop.permute.xlu1 %51 }
 0x130   :  { %v54_v29 = vadd.f32 %v52_v28, %v47_v26  ;;  %v55_v30 = vadd.f32 %v52_v28, %v48_v27 }
 0x132   :  { %56 = vst.msk [vmem:[#allocation2] sm:$0xf] %vm17_vm0, %v54_v29  ;;  %57 = vst.msk [vmem:[#allocation2 + $0x4] sm:$0xf] %vm17_vm0, %v55_v30 }
 0x133   :  { %93 = shalt.err (!%p90_p4)
}
 0x134   :  { %s94_s22 = scalar_lea.hbm %s163_s3, 128 }
 0x135   :  { %p95_p5 = scmp.ne.s32.totalorder %s163_s3, %s94_s22  ;;  %p98_p6 = scmp.lt.u32.totalorder %s94_s22, %s163_s3 }
 0x137   :  { %p100_p7 = pnand %p98_p6, %p95_p5 }
 0x139   :  { %103 = shalt.err (!%p100_p7)
}
 0x13a   :  { %s108_s27 = smov 64   ;;  %s109_s28 = smov 4  }
 0x13b   :  { %69 = dma.vmem_to_hbm [thread:$0]  %s64_s20, 128, %s163_s3, [#allocation3], %s108_s27, %s108_s27, %s109_s28  }
 0x13c   :  { %104 = dma.done.wait [#allocation3], 128  }
 0x13d   :  { %105 = vsyncadd [#allocation3], 4294967168 }
 0x13e   :  { %73 = vsyncpa [#allocation3], 1 }

</bundles_post_ra>
